<compile_context>
chip_gen: v7x
topology: tpu7x:2x2x1
jax: 0.10.0
libtpu: 0.0.40
codegen_flags: <defaults>
</compile_context>

<pallas_src>
import math
import jax
import jax.numpy as jnp
from jax import lax
from jax.experimental import pallas as pl
from jax.experimental.pallas import tpu as pltpu

EPS = 1e-6


def block_kernel(x_ref, w_ref, b_ref, g_ref, o_ref):
    # Linear: x @ W + b   (MXU, f32 accumulate)
    h = jnp.dot(x_ref[...], w_ref[...], preferred_element_type=jnp.float32)
    h = h + b_ref[...]                           # broadcast [1, n_out]

    # RMSNorm in float32 (mirrors .float() in the PyTorch RMSNorm).
    # NOTE: reduction is over the FULL n_out width; n_out is never tiled
    # across the grid, so the mean stays correct.
    ms = jnp.mean(h * h, axis=-1, keepdims=True)
    hn = h * lax.rsqrt(ms + EPS)
    hn = hn.astype(o_ref.dtype) * g_ref[...]     # .type_as(x), then * weight

    # Exact (erf) GELU — matches torch.nn.functional.gelu default.
    out = 0.5 * hn * (1.0 + lax.erf(hn * (1.0 / math.sqrt(2.0))))

    # Dropout: eval-mode identity.
    # TODO(synk): training-mode dropout (pltpu.prng_random_bits mask) not emitted.
    o_ref[...] = out.astype(o_ref.dtype)


def block_forward(x, w_t, bias, rms_weight, *, tile_m=128):
    """x: [B, n_in] f32, w_t: [n_in, n_out], bias/rms_weight: [n_out]."""
    B, n_in = x.shape
    n_out = w_t.shape[1]

    # Row tile: large (MXU-friendly) when B allows, otherwise round B up to a
    # sublane multiple. Pad B so every grid step sees a full, lane-dense tile.
    if B >= tile_m:
        tm = tile_m
    else:
        tm = max(8, ((B + 7) // 8) * 8)
    b_pad = pl.cdiv(B, tm) * tm
    if b_pad != B:
        x = jnp.pad(x, ((0, b_pad - B), (0, 0)))

    b2 = bias.reshape(1, n_out).astype(jnp.float32)
    g2 = rms_weight.reshape(1, n_out)

    grid = (b_pad // tm,)
    itemsize = x.dtype.itemsize

    # VMEM budget: resident weight + double-buffered x/out tiles + params.
    vmem_need = (w_t.size * w_t.dtype.itemsize
                 + 2 * (tm * n_in + tm * n_out) * itemsize
                 + 4 * n_out * 4)
    vmem_limit = int(min(max(2 * vmem_need, 16 * 1024 * 1024),
                         48 * 1024 * 1024))

    cost = pl.CostEstimate(
        flops=2 * b_pad * n_in * n_out,
        transcendentals=2 * b_pad * n_out,        # rsqrt + erf per output
        bytes_accessed=(b_pad * n_in + n_in * n_out
                        + 2 * n_out + b_pad * n_out) * itemsize,
    )

    out = pl.pallas_call(
        block_kernel,
        out_shape=jax.ShapeDtypeStruct((b_pad, n_out), x.dtype),
        grid_spec=pltpu.PrefetchScalarGridSpec(
            num_scalar_prefetch=0,
            grid=grid,
            in_specs=[
                pl.BlockSpec((tm, n_in), lambda i: (i, 0)),      # streamed
                pl.BlockSpec((n_in, n_out), lambda i: (0, 0)),   # resident
                pl.BlockSpec((1, n_out), lambda i: (0, 0)),      # resident
                pl.BlockSpec((1, n_out), lambda i: (0, 0)),      # resident
            ],
            out_specs=pl.BlockSpec((tm, n_out), lambda i: (i, 0)),
        ),
        compiler_params=pltpu.CompilerParams(
            dimension_semantics=("parallel",),      # 2-TC shard on v7x
            vmem_limit_bytes=vmem_limit,
        ),
        cost_estimate=cost,
    )(x, w_t, b2, g2)

    return out[:B]


def reference_forward(x, w_t, bias, rms_weight):
    h = x @ w_t + bias
    ms = jnp.mean(h.astype(jnp.float32) ** 2, axis=-1, keepdims=True)
    hn = (h.astype(jnp.float32) * lax.rsqrt(ms + EPS)).astype(x.dtype) * rms_weight
    return 0.5 * hn * (1.0 + lax.erf(hn / math.sqrt(2.0)))


if __name__ == "__main__":
    key = jax.random.PRNGKey(0)
    B, n_in, n_out = 200, 32, 128   # B not a tile multiple -> exercises padding

    k_x, k_w, k_b = jax.random.split(key, 3)
    x = jax.random.normal(k_x, (B, n_in), dtype=jnp.float32)

    # Deterministic parameter init (mirrors nn.Linear + xavier_uniform_)
    xav_bound = math.sqrt(6.0 / (n_in + n_out))
    w = jax.random.uniform(k_w, (n_out, n_in), jnp.float32,
                           minval=-xav_bound, maxval=xav_bound)   # torch layout
    lin_bound = 1.0 / math.sqrt(n_in)
    bias = jax.random.uniform(k_b, (n_out,), jnp.float32,
                              minval=-lin_bound, maxval=lin_bound)
    rms_weight = jnp.ones((n_out,), jnp.float32)

    w_t = w.T  # [n_in, n_out] for the kernel (feature dim -> lanes)

    out = block_forward(x, w_t, bias, rms_weight)
    jax.block_until_ready(out)

    ref = reference_forward(x, w_t, bias, rms_weight)
    assert out.shape == (B, n_out)
    assert jnp.allclose(out, ref, atol=1e-5, rtol=1e-5)
    print("KERNEL_OK")
</pallas_src>

<mosaic_0001>
module attributes {stable_mosaic.version = 11 : i64} {
  func.func @block_kernel(%arg0: i32, %arg1: memref<128x32xf32, #tpu.memory_space<vmem>>, %arg2: memref<32x128xf32, #tpu.memory_space<vmem>>, %arg3: memref<1x128xf32, #tpu.memory_space<vmem>>, %arg4: memref<1x128xf32, #tpu.memory_space<vmem>>, %arg5: memref<128x128xf32, #tpu.memory_space<vmem>>) attributes {dimension_semantics = [#tpu.dimension_semantics<parallel>], iteration_bounds = array<i64: 2>, scalar_prefetch = 0 : i64, scratch_operands = 0 : i64, tpu.core_type = #tpu.core_type<tc>, window_params = [{transform_indices = @transform_0, window_bounds = array<i64: 128, 32>}, {pipeline_mode = #tpu.pipeline_mode<synchronous>, transform_indices = @transform_1, window_bounds = array<i64: 32, 128>}, {pipeline_mode = #tpu.pipeline_mode<synchronous>, transform_indices = @transform_2, window_bounds = array<i64: 1, 128>}, {pipeline_mode = #tpu.pipeline_mode<synchronous>, transform_indices = @transform_3, window_bounds = array<i64: 1, 128>}, {transform_indices = @transform_4, window_bounds = array<i64: 128, 128>}]} {
    %c0 = arith.constant 0 : index
    %c0_0 = arith.constant 0 : index
    %0 = vector.load %arg1[%c0, %c0_0] : memref<128x32xf32, #tpu.memory_space<vmem>>, vector<128x32xf32>
    %c0_1 = arith.constant 0 : index
    %c0_2 = arith.constant 0 : index
    %1 = vector.load %arg2[%c0_1, %c0_2] : memref<32x128xf32, #tpu.memory_space<vmem>>, vector<32x128xf32>
    %cst = arith.constant dense<0.000000e+00> : vector<128x128xf32>
    %2 = tpu.matmul %0, %1, %cst {dimension_numbers = #tpu.dot_dimension_numbers<[1], [0], [0], [1], [0, 0, 1, 1], [], []>} : vector<128x32xf32>, vector<32x128xf32>, vector<128x128xf32> -> vector<128x128xf32>
    %c0_3 = arith.constant 0 : index
    %c0_4 = arith.constant 0 : index
    %3 = vector.load %arg3[%c0_3, %c0_4] : memref<1x128xf32, #tpu.memory_space<vmem>>, vector<1x128xf32>
    %4 = vector.broadcast %3 : vector<1x128xf32> to vector<128x128xf32>
    %5 = arith.addf %2, %4 : vector<128x128xf32>
    %6 = arith.mulf %5, %5 : vector<128x128xf32>
    %cst_5 = arith.constant dense<0.000000e+00> : vector<128xf32>
    %7 = vector.multi_reduction <add>, %6, %cst_5 [1] : vector<128x128xf32> to vector<128xf32>
    %8 = vector.shape_cast %7 : vector<128xf32> to vector<128x1xf32>
    %cst_6 = arith.constant 1.280000e+02 : f32
    %9 = vector.broadcast %cst_6 : f32 to vector<128x1xf32>
    %10 = arith.divf %8, %9 : vector<128x1xf32>
    %cst_7 = arith.constant 9.99999997E-7 : f32
    %11 = vector.broadcast %cst_7 : f32 to vector<128x1xf32>
    %12 = arith.addf %10, %11 : vector<128x1xf32>
    %13 = math.rsqrt %12 : vector<128x1xf32>
    %14 = vector.broadcast %13 : vector<128x1xf32> to vector<128x128xf32>
    %15 = arith.mulf %5, %14 : vector<128x128xf32>
    %c0_8 = arith.constant 0 : index
    %c0_9 = arith.constant 0 : index
    %16 = vector.load %arg4[%c0_8, %c0_9] : memref<1x128xf32, #tpu.memory_space<vmem>>, vector<1x128xf32>
    %17 = vector.broadcast %16 : vector<1x128xf32> to vector<128x128xf32>
    %18 = arith.mulf %15, %17 : vector<128x128xf32>
    %cst_10 = arith.constant 5.000000e-01 : f32
    %19 = vector.broadcast %cst_10 : f32 to vector<128x128xf32>
    %20 = arith.mulf %19, %18 : vector<128x128xf32>
    %cst_11 = arith.constant 0.707106769 : f32
    %21 = vector.broadcast %cst_11 : f32 to vector<128x128xf32>
    %22 = arith.mulf %18, %21 : vector<128x128xf32>
    %23 = math.erf %22 : vector<128x128xf32>
    %cst_12 = arith.constant 1.000000e+00 : f32
    %24 = vector.broadcast %cst_12 : f32 to vector<128x128xf32>
    %25 = arith.addf %24, %23 : vector<128x128xf32>
    %26 = arith.mulf %20, %25 : vector<128x128xf32>
    %c0_13 = arith.constant 0 : index
    %c0_14 = arith.constant 0 : index
    %27 = vector.load %arg5[%c0_13, %c0_14] : memref<128x128xf32, #tpu.memory_space<vmem>>, vector<128x128xf32>
    tpu.vector_store %arg5[%c0_13, %c0_14], %26 {strides = array<i32>} : memref<128x128xf32, #tpu.memory_space<vmem>>, vector<128x128xf32>,
    return
  }
  func.func @transform_0(%arg0: i32) -> (i32, i32) {
    %c0_i32 = arith.constant 0 : i32
    %c0_i32_0 = arith.constant 0 : i32
    return %arg0, %c0_i32 : i32, i32
  }
  func.func @transform_1(%arg0: i32) -> (i32, i32) {
    %c0_i32 = arith.constant 0 : i32
    %c0_i32_0 = arith.constant 0 : i32
    %c0_i32_1 = arith.constant 0 : i32
    return %c0_i32, %c0_i32_0 : i32, i32
  }
  func.func @transform_2(%arg0: i32) -> (i32, i32) {
    %c0_i32 = arith.constant 0 : i32
    %c0_i32_0 = arith.constant 0 : i32
    %c0_i32_1 = arith.constant 0 : i32
    return %c0_i32, %c0_i32_0 : i32, i32
  }
  func.func @transform_3(%arg0: i32) -> (i32, i32) {
    %c0_i32 = arith.constant 0 : i32
    %c0_i32_0 = arith.constant 0 : i32
    %c0_i32_1 = arith.constant 0 : i32
    return %c0_i32, %c0_i32_0 : i32, i32
  }
  func.func @transform_4(%arg0: i32) -> (i32, i32) {
    %c0_i32 = arith.constant 0 : i32
    %c0_i32_0 = arith.constant 0 : i32
    return %arg0, %c0_i32 : i32, i32
  }
}

</mosaic_0001>

<bundles_post_ra>
// kernel: tpu_custom_call.1
= control target key start
LH: loop header
LB: loop body
LE: loop exit
PB: predicated region body
PF: predicated region fallthrough
CT: control target
= control target key end

     0   :  { %9 = vsyncpa [#allocation3], 0  ;;  %s1327_s0 = inlined_call_operand.vmem [shape: f32[256,32], index: 0, kind: input, shape index: {}]   ;;  %s1328_s1 = inlined_call_operand.vmem [shape: f32[32,128], index: 1, kind: input, shape index: {}]   ;;  %s1329_s2 = inlined_call_operand.vmem [shape: f32[1,128], index: 2, kind: input, shape index: {}]   ;;  %s1330_s3 = inlined_call_operand.vmem [shape: f32[1,128], index: 3, kind: input, shape index: {}]   ;;  %s1331_s4 = inlined_call_operand.hbm [shape: f32[256,128], index: 4, kind: output, shape index: {}]  }
   0x1   :  { %11 = vsyncpa [#allocation3 + $0x1], 0  ;;  %s1020_s15 = smov 0   ;;  %s1022_s16 = smov 0  }
   0x2   :  { %s1024_s17 = smov 0   ;;  %s1026_s18 = smov 0  }
   0x3 LB: > { %s1041_s19 = sadd.s32 4294967295, %s990_s18   ;;  %s728_s20 = sadd.s32 4294967294, %s990_s18   ;;  %s990_s18 = sphi %s1026_s18, %s1337_s18   ;;  %s986_s17 = sphi %s1024_s17, %s1336_s17   ;;  %s982_s16 = sphi %s1022_s16, %s1335_s16   ;;  %s978_s15 = sphi %s1020_s15, %s1334_s15  }
   0x4   : > { %s1045_s21 = sadd.s32 1, %s990_s18   ;;  %s113_s22 = sadd.s32 1, %s986_s17 }
   0x5   : > { %s110_s23 = ssub.s32 %s990_s18, %s1045_s21  ;;  %p123_p0 = scmp.ne.s32.totalorder %s986_s17, %s982_s16 }
   0x6   : > { %p111_p1 = scmp.eq.s32.totalorder %s110_s23, 0  ;;  %p124_p2 = scmp.eq.s32.totalorder %s1041_s19, 1 }
   0x7   : > { %p129_p3 = scmp.ne.s32.totalorder %s982_s16, %s978_s15  ;;  %p130_p4 = scmp.eq.s32.totalorder %s728_s20, 1 }
   0x8   : > { %s1056_s24 = scalar_select %p111_p1, %s986_s17, %s113_s22  }
   0x9   : > { %p1058_p5 = por %p124_p2, %p123_p0  ;;  %p1062_p6 = por %p130_p4, %p129_p3 }
   0xa   : > { %p731_p7 = scmp.ge.s32.totalorder %s990_s18, 1  ;;  %p166_p8 = scmp.lt.s32.totalorder %s990_s18, 3 }
   0xc   : > { %p167_p9 = pnand %p731_p7, %p166_p8 }
   0xd   : > { %v215_v0 = vld [vmem:[%s1328_s1] sm:$0xff] (!%p167_p9)  ;;  %v216_v1 = vld [vmem:[%s1328_s1 + $0x8] sm:$0xff] (!%p167_p9)  ;;  %v217_v2 = vld [vmem:[%s1328_s1 + $0x10] sm:$0xff] (!%p167_p9)  ;;  %s733_s7 = sshll.u32 (!%p167_p9), %s1041_s19, 4  ;;  %vm226_vm0 = vcmask (!%p167_p9), 261120   ;;  %s189_s27 = sand.u32 (!%p167_p9), 1, %s982_s16  }
   0xe   : > { %170 = sbr.rel (%p167_p9) target bundleno = 468 (0x1d4), region = 36  ;;  %v811_v3 = vpack.c.bf16 (!%p167_p9), %v216_v1, %v215_v0  ;;  %v218_v4 = vld [vmem:[%s1328_s1 + $0x18] sm:$0xff] (!%p167_p9)  ;;  %p193_p10 = scmp.lt.s32.totalorder (!%p167_p9), %s733_s7, 31  ;;  %v735_v22 = vld [vmem:[%s1329_s2] ss:$0 sm:$0xff] (!%p167_p9) }
   0xf   : > { %v815_v5 = vpack.c.bf16 (!%p167_p9), %v218_v4, %v217_v2  ;;  %s732_s28 = sshll.u32 (!%p167_p9), %s189_s27, 7  ;;  %s758_s30 = sshll.u32 (!%p167_p9), %s1041_s19, 11 }
  0x10   : > { %812 = vmatprep.subr.bf16.mxu0 (!%p167_p9), %v811_v3  ;;  %819 = vmatprep.subr.bf16.mxu1 (!%p167_p9), %v811_v3  ;;  %s1233_s29 = scalar_lea.vmem (!%p167_p9), [#allocation2], %s732_s28  ;;  %s1278_s8 = scalar_lea.hbm (!%p167_p9), %s1331_s4, %s758_s30 }
  0x11   : > { %814 = vmatpush3.bf16.msra.mxu0 (!%p167_p9), %v811_v3  ;;  %821 = vmatpush3.bf16.msra.mxu1 (!%p167_p9), %v811_v3  ;;  %s666_s5 = sshll.u32 (!%p167_p9), %s1233_s29, 4  ;;  %s1286_s19 = scalar_lea.sflag (!%p167_p9), [#allocation3], %s189_s27  ;;  %s1280_s5 = int_to_ptr.vmem [resolvable:$true] %s666_s5 }
  0x12   : > { %816 = vmatprep.subr.bf16.mxu0 (!%p167_p9), %v815_v5  ;;  %820 = vmatprep.subr.bf16.mxu1 (!%p167_p9), %v815_v5  ;;  %s928_s9 = scalar_lea.vmem (!%p167_p9), %s1280_s5, 2048 }
  0x13   : > { %p929_p11 = scmp.ne.s32.totalorder (!%p167_p9), %s1280_s5, %s928_s9 }
  0x15   : > { %s1339_s7 = smov (!%p193_p10, %s733_s7), 31  ;;  %818 = vmatpush3.bf16.msra.mxu0 %v815_v5  ;;  %822 = vmatpush3.bf16.msra.mxu1 %v815_v5  ;;  %p930_p12 = pnand %p929_p11, %p1058_p5 }
  0x16   : > { %s734_s10 = sshll.u32 %s1339_s7, 3 }
  0x17   : > { %s1084_s13 = scalar_lea.vmem %s1327_s0, %s734_s10  ;;  %p931_p13 = pneg %p930_p12 }
  0x18   : > { %v199_v6 = vld [vmem:[%s1084_s13] sm:$0xff]  ;;  %v200_v8 = vld [vmem:[%s1084_s13 + $0x8] sm:$0xff]  ;;  %v201_v10 = vld [vmem:[%s1084_s13 + $0x10] sm:$0xff]  ;;  %s992_s10 = smov [#allocation2]  }
  0x19   : > { %v207_v7 = vld [vmem:[%s1084_s13 + $0x40] sm:$0xff]  ;;  %v208_v9 = vld [vmem:[%s1084_s13 + $0x48] sm:$0xff]  ;;  %787 = vmatprep.mubr.msk.f32.mxu0 %vm226_vm0, %v199_v6  ;;  %v209_v11 = vld [vmem:[%s1084_s13 + $0x50] sm:$0xff]  ;;  %s932_s11 = sshll.u32 %s992_s10, 4  ;;  %s933_s11 = int_to_ptr.vmem [resolvable:$false] %s932_s11 }
  0x1a   : > { %799 = vmatprep.mubr.msk.f32.mxu1 %vm226_vm0, %v207_v7  ;;  %788 = vmatmul.mubr.msk.f32.vlgmr.msra.gmra.mrb[0].mxu0 %vm226_vm0, %v200_v8  ;;  %v202_v12 = vld [vmem:[%s1084_s13 + $0x18] sm:$0xff]  ;;  %v203_v14 = vld [vmem:[%s1084_s13 + $0x20] sm:$0xff]  ;;  %v204_v16 = vld [vmem:[%s1084_s13 + $0x28] sm:$0xff]  ;;  %s934_s12 = scalar_lea.vmem %s933_s11, 4096  ;;  %p935_p0 = scmp.lt.s32.totalorder %s1280_s5, %s933_s11 }
  0x1b   : > { %800 = vmatmul.mubr.msk.f32.vlgmr.msra.gmra.mrb[0].mxu1 %vm226_vm0, %v208_v9  ;;  %790 = vmatprep.mubr.msk.f32.mxu0 %vm226_vm0, %v201_v10  ;;  %v210_v13 = vld [vmem:[%s1084_s13 + $0x58] sm:$0xff]  ;;  %v211_v15 = vld [vmem:[%s1084_s13 + $0x60] sm:$0xff]  ;;  %v212_v17 = vld [vmem:[%s1084_s13 + $0x68] sm:$0xff]  ;;  %p936_p1 = scmp.lt.s32.totalorder %s934_s12, %s928_s9 }
  0x1c   : > { %802 = vmatprep.mubr.msk.f32.mxu1 %vm226_vm0, %v209_v11  ;;  %v205_v18 = vld [vmem:[%s1084_s13 + $0x30] sm:$0xff]  ;;  %v206_v20 = vld [vmem:[%s1084_s13 + $0x38] sm:$0xff] }
  0x1d   : > { %v213_v19 = vld [vmem:[%s1084_s13 + $0x70] sm:$0xff]  ;;  %v214_v21 = vld [vmem:[%s1084_s13 + $0x78] sm:$0xff]  ;;  %p937_p2 = por %p936_p1, %p935_p0 }
  0x1e   : > { %791 = vmatmul.mubr.msk.f32.gmra.mrb[2].mxu0 %vm226_vm0, %v202_v12 }
  0x1f   : > { %803 = vmatmul.mubr.msk.f32.gmra.mrb[2].mxu1 %vm226_vm0, %v210_v13  ;;  %793 = vmatprep.mubr.msk.f32.mxu0 %vm226_vm0, %v203_v14  ;;  %p938_p3 = pnand %p937_p2, %p931_p13 }
  0x20   : > { %805 = vmatprep.mubr.msk.f32.mxu1 %vm226_vm0, %v211_v15 }
  0x22   : > { %794 = vmatmul.mubr.msk.f32.gmra.mrb[4].mxu0 %vm226_vm0, %v204_v16 }
  0x23   : > { %806 = vmatmul.mubr.msk.f32.gmra.mrb[4].mxu1 %vm226_vm0, %v212_v17  ;;  %796 = vmatprep.mubr.msk.f32.mxu0 %vm226_vm0, %v205_v18 }
  0x24   : > { %808 = vmatprep.mubr.msk.f32.mxu1 %vm226_vm0, %v213_v19 }
  0x26   : > { %797 = vmatmul.mubr.msk.f32.gmra.mrb[6].mxu0 %vm226_vm0, %v206_v20 }
  0x27   : > { %809 = vmatmul.mubr.msk.f32.gmra.mrb[6].mxu1 %vm226_vm0, %v214_v21 }
  0xed   : > { %v789_v23 = vpop.f32.mrb[0].mxu0 }
  0xee   : > { %v801_v24 = vpop.f32.mrb[0].mxu1  ;;  %v1121_v25 = vadd.f32 %v789_v23, %v735_v22  ;;  %v341_v27 = vpop.f32.mrb[1].mxu0 }
  0xef   : > { %v1123_v26 = vadd.f32 %v801_v24, %v735_v22  ;;  %v381_v28 = vpop.f32.mrb[1].mxu1  ;;  %v1125_v29 = vadd.f32 %v735_v22, %v341_v27 }
  0xf0   : > { %v421_v31 = vmul.f32 %v1121_v25, %v1121_v25  ;;  %v1135_v38 = vadd.f32 %v735_v22, %v381_v28 }
  0xf1   : > { %v429_v30 = vmul.f32 %v1123_v26, %v1123_v26  ;;  %v792_v32 = vpop.f32.mrb[2].mxu0  ;;  %v420_v40 = vmul.f32 %v1125_v29, %v1125_v29 }
  0xf2   : > { %v804_v33 = vpop.f32.mrb[2].mxu1  ;;  %v1131_v34 = vadd.f32 %v792_v32, %v735_v22  ;;  %438 = vadd.xlane.f32.xlu0 %v421_v31  ;;  %v351_v35 = vpop.f32.mrb[3].mxu0  ;;  %v428_v48 = vmul.f32 %v1135_v38, %v1135_v38 }
  0xf3   : > { %454 = vadd.xlane.f32.xlu1 %v429_v30  ;;  %v1133_v36 = vadd.f32 %v804_v33, %v735_v22  ;;  %v391_v37 = vpop.f32.mrb[3].mxu1  ;;  %v1143_v46 = vadd.f32 %v735_v22, %v351_v35  ;;  %v1188_v33 = vld [vmem:[%s1330_s3] ss:$0 sm:$0xff] }
  0xf4   : > { %v423_v39 = vmul.f32 %v1131_v34, %v1131_v34  ;;  %v1145_v47 = vadd.f32 %v735_v22, %v391_v37 }
  0xf5   : > { %v795_v41 = vpop.f32.mrb[4].mxu0  ;;  %v431_v43 = vmul.f32 %v1133_v36, %v1133_v36  ;;  %v422_v55 = vmul.f32 %v1143_v46, %v1143_v46 }
  0xf6   : > { %v807_v42 = vpop.f32.mrb[4].mxu1  ;;  %436 = vadd.xlane.f32.xlu0 %v420_v40  ;;  %v361_v44 = vpop.f32.mrb[5].mxu0  ;;  %v1149_v51 = vadd.f32 %v795_v41, %v735_v22  ;;  %v430_v56 = vmul.f32 %v1145_v47, %v1145_v47 }
  0xf7   : > { %442 = vadd.xlane.f32.xlu1 %v423_v39  ;;  %v401_v45 = vpop.f32.mrb[5].mxu1  ;;  %v1151_v52 = vadd.f32 %v735_v22, %v361_v44  ;;  %v1157_v57 = vadd.f32 %v807_v42, %v735_v22 }
  0xf8   : > { %v1159_v58 = vadd.f32 %v735_v22, %v401_v45  ;;  %v425_v59 = vmul.f32 %v1149_v51, %v1149_v51 }
  0xf9   : > { %v798_v49 = vpop.f32.mrb[6].mxu0  ;;  %v424_v60 = vmul.f32 %v1151_v52, %v1151_v52  ;;  %v433_v61 = vmul.f32 %v1157_v57, %v1157_v57 }
  0xfa   : > { %v810_v50 = vpop.f32.mrb[6].mxu1  ;;  %452 = vadd.xlane.f32.xlu0 %v428_v48  ;;  %v371_v53 = vpop.f32.mrb[7].mxu0  ;;  %v1167_v62 = vadd.f32 %v798_v49, %v735_v22  ;;  %v432_v0 = vmul.f32 %v1159_v58, %v1159_v58 }
  0xfb   : > { %458 = vadd.xlane.f32.xlu1 %v431_v43  ;;  %v411_v54 = vpop.f32.mrb[7].mxu1  ;;  %v1169_v63 = vadd.f32 %v735_v22, %v371_v53  ;;  %v1173_v1 = vadd.f32 %v810_v50, %v735_v22 }
  0xfc   : > { %v1175_v2 = vadd.f32 %v735_v22, %v411_v54  ;;  %v427_v3 = vmul.f32 %v1167_v62, %v1167_v62 }
  0xfd   : > { %v426_v4 = vmul.f32 %v1169_v63, %v1169_v63  ;;  %v435_v5 = vmul.f32 %v1173_v1, %v1173_v1 }
  0xfe   : > { %456 = vadd.xlane.f32.xlu0 %v430_v56  ;;  %v434_v6 = vmul.f32 %v1175_v2, %v1175_v2 }
  0xff   : > { %440 = vadd.xlane.f32.xlu1 %v422_v55 }
 0x102   : > { %444 = vadd.xlane.f32.xlu0 %v424_v60 }
 0x103   : > { %446 = vadd.xlane.f32.xlu1 %v425_v59 }
 0x106   : > { %460 = vadd.xlane.f32.xlu0 %v432_v0 }
 0x107   : > { %462 = vadd.xlane.f32.xlu1 %v433_v61 }
 0x10a   : > { %448 = vadd.xlane.f32.xlu0 %v426_v4 }
 0x10b   : > { %450 = vadd.xlane.f32.xlu1 %v427_v3 }
 0x10e   : > { %464 = vadd.xlane.f32.xlu0 %v434_v6 }
 0x10f   : > { %466 = vadd.xlane.f32.xlu1 %v435_v5 }
 0x17f   : > { %v439_v8 = vpop.xlane.xlu0 %438 }
 0x180   : > { %v455_v7 = vpop.xlane.xlu1 %454  ;;  %v470_v10 = vmul.f32 0.0078125, %v439_v8 }
 0x181   : > { %v478_v9 = vmul.f32 0.0078125, %v455_v7 }
 0x182   : > { %v486_v12 = vadd.f32 1e-06, %v470_v10 }
 0x183   : > { %v494_v11 = vadd.f32 1e-06, %v478_v9  ;;  %v437_v14 = vpop.xlane.xlu0 %436 }
 0x184   : > { %v443_v13 = vpop.xlane.xlu1 %442  ;;  %v469_v16 = vmul.f32 0.0078125, %v437_v14 }
 0x185   : > { %864 = vrsqrt.f32 %v494_v11  ;;  %v472_v15 = vmul.f32 0.0078125, %v443_v13 }
 0x186   : > { %866 = vrsqrt.f32 %v486_v12  ;;  %v485_v18 = vadd.f32 1e-06, %v469_v16 }
 0x187   : > { %v488_v17 = vadd.f32 1e-06, %v472_v15  ;;  %v453_v20 = vpop.xlane.xlu0 %452 }
 0x188   : > { %v459_v19 = vpop.xlane.xlu1 %458  ;;  %v477_v22 = vmul.f32 0.0078125, %v453_v20 }
 0x189   : > { %868 = vrsqrt.f32 %v488_v17  ;;  %v480_v21 = vmul.f32 0.0078125, %v459_v19 }
 0x18a   : > { %870 = vrsqrt.f32 %v485_v18  ;;  %v493_v24 = vadd.f32 1e-06, %v477_v22 }
 0x18b   : > { %v496_v23 = vadd.f32 1e-06, %v480_v21  ;;  %v457_v28 = vpop.xlane.xlu0 %456 }
 0x18c   : > { %v441_v27 = vpop.xlane.xlu1 %440  ;;  %v479_v31 = vmul.f32 0.0078125, %v457_v28 }
 0x18d   : > { %872 = vrsqrt.f32 %v496_v23  ;;  %v471_v30 = vmul.f32 0.0078125, %v441_v27 }
 0x18e   : > { %874 = vrsqrt.f32 %v493_v24  ;;  %v495_v37 = vadd.f32 1e-06, %v479_v31 }
 0x18f   : > { %v865_v32 = vpop.eup %864  ;;  %v487_v35 = vadd.f32 1e-06, %v471_v30  ;;  %v445_v42 = vpop.xlane.xlu0 %444 }
 0x190   : > { %v867_v39 = vpop.eup %866  ;;  %v526_v40 = vmul.f32 %v865_v32, %v1123_v26  ;;  %v447_v41 = vpop.xlane.xlu1 %446  ;;  %v473_v45 = vmul.f32 0.0078125, %v445_v42 }
 0x191   : > { %v518_v43 = vmul.f32 %v867_v39, %v1121_v25  ;;  %876 = vrsqrt.f32 %v487_v35  ;;  %v474_v44 = vmul.f32 0.0078125, %v447_v41 }
 0x192   : > { %v549_v48 = vmul.f32 %v1188_v33, %v526_v40  ;;  %878 = vrsqrt.f32 %v495_v37  ;;  %v489_v59 = vadd.f32 1e-06, %v473_v45 }
 0x193   : > { %v869_v49 = vpop.eup %868  ;;  %v541_v50 = vmul.f32 %v1188_v33, %v518_v43  ;;  %v490_v53 = vadd.f32 1e-06, %v474_v44  ;;  %v461_v60 = vpop.xlane.xlu0 %460 }
 0x194   : > { %v871_v54 = vpop.eup %870  ;;  %v581_v55 = vmul.f32 0.70710677, %v549_v48  ;;  %v520_v56 = vmul.f32 %v869_v49, %v1131_v34  ;;  %v463_v26 = vpop.xlane.xlu1 %462  ;;  %v481_v4 = vmul.f32 0.0078125, %v461_v60  ;;  %v565_v37 = vmul.f32 0.5, %v549_v48 }
 0x195   : > { %v573_v61 = vmul.f32 0.70710677, %v541_v50  ;;  %v517_v25 = vmul.f32 %v871_v54, %v1125_v29  ;;  %880 = vrsqrt.f32 %v490_v53  ;;  %v482_v3 = vmul.f32 0.0078125, %v463_v26 }
 0x196   : > { %882 = verf.f32 %v581_v55  ;;  %v1197_v0 = vmul.f32 %v1188_v33, %v520_v56  ;;  %v497_v14 = vadd.f32 1e-06, %v481_v4  ;;  %v557_v42 = vmul.f32 0.5, %v541_v50 }
 0x197   : > { %v873_v5 = vpop.eup %872  ;;  %884 = verf.f32 %v573_v61  ;;  %v1200_v6 = vmul.f32 %v1188_v33, %v517_v25  ;;  %v449_v9 = vpop.xlane.xlu0 %448  ;;  %v498_v12 = vadd.f32 1e-06, %v482_v3 }
 0x198   : > { %v875_v7 = vpop.eup %874  ;;  %v575_v34 = vmul.f32 0.70710677, %v1197_v0  ;;  %v528_v8 = vmul.f32 %v873_v5, %v1133_v36  ;;  %886 = vrsqrt.f32 %v489_v59  ;;  %v451_v29 = vpop.xlane.xlu1 %450  ;;  %v475_v36 = vmul.f32 0.0078125, %v449_v9 }
 0x199   : > { %v572_v10 = vmul.f32 0.70710677, %v1200_v6  ;;  %v525_v11 = vmul.f32 %v875_v7, %v1135_v38  ;;  %v476_v15 = vmul.f32 0.0078125, %v451_v29  ;;  %v559_v26 = vmul.f32 0.5, %v1197_v0 }
 0x19a   : > { %888 = verf.f32 %v575_v34  ;;  %v1207_v13 = vmul.f32 %v1188_v33, %v528_v8  ;;  %v491_v28 = vadd.f32 1e-06, %v475_v36  ;;  %v556_v25 = vmul.f32 0.5, %v1200_v6 }
 0x19b   : > { %v877_v16 = vpop.eup %876  ;;  %890 = verf.f32 %v572_v10  ;;  %v1210_v17 = vmul.f32 %v1188_v33, %v525_v11  ;;  %v465_v21 = vpop.xlane.xlu0 %464  ;;  %v492_v27 = vadd.f32 1e-06, %v476_v15 }
 0x19c   : > { %v879_v18 = vpop.eup %878  ;;  %v583_v19 = vmul.f32 0.70710677, %v1207_v13  ;;  %v519_v38 = vmul.f32 %v877_v16, %v1143_v46  ;;  %892 = vrsqrt.f32 %v498_v12  ;;  %v467_v20 = vpop.xlane.xlu1 %466  ;;  %v483_v32 = vmul.f32 0.0078125, %v465_v21 }
 0x19d   : > { %v580_v22 = vmul.f32 0.70710677, %v1210_v17  ;;  %v527_v23 = vmul.f32 %v879_v18, %v1145_v47  ;;  %894 = vrsqrt.f32 %v497_v14  ;;  %v484_v31 = vmul.f32 0.0078125, %v467_v20 }
 0x19e   : > { %896 = verf.f32 %v583_v19  ;;  %v1218_v24 = vmul.f32 %v1188_v33, %v519_v38  ;;  %v499_v55 = vadd.f32 1e-06, %v483_v32  ;;  %v567_v10 = vmul.f32 0.5, %v1207_v13 }
 0x19f   : > { %v881_v30 = vpop.eup %880  ;;  %898 = verf.f32 %v580_v22  ;;  %v1223_v46 = vmul.f32 %v1188_v33, %v527_v23  ;;  %v500_v53 = vadd.f32 1e-06, %v484_v31  ;;  %v564_v14 = vmul.f32 0.5, %v1210_v17 }
 0x1a0   : > { %v883_v35 = vpop.eup %882  ;;  %v574_v47 = vmul.f32 0.70710677, %v1218_v24  ;;  %v522_v39 = vmul.f32 %v881_v30, %v1149_v51  ;;  %900 = vrsqrt.f32 %v492_v27  ;;  %v558_v22 = vmul.f32 0.5, %v1218_v24 }
 0x1a1   : > { %v885_v40 = vpop.eup %884  ;;  %v613_v41 = vadd.f32 1.0, %v883_v35  ;;  %v582_v43 = vmul.f32 0.70710677, %v1223_v46  ;;  %902 = vrsqrt.f32 %v491_v28  ;;  %v566_v28 = vmul.f32 0.5, %v1223_v46 }
 0x1a2   : > { %v887_v44 = vpop.eup %886  ;;  %v605_v45 = vadd.f32 1.0, %v885_v40  ;;  %904 = verf.f32 %v574_v47  ;;  %v1229_v49 = vmul.f32 %v1188_v33, %v522_v39 }
 0x1a3   : > { %v629_v54 = vmul.f32 %v613_v41, %v565_v37  ;;  %906 = verf.f32 %v582_v43  ;;  %v521_v48 = vmul.f32 %v887_v44, %v1151_v52 }
 0x1a4   : > { %v889_v51 = vpop.eup %888  ;;  %v621_v56 = vmul.f32 %v605_v45, %v557_v42  ;;  %v577_v59 = vmul.f32 0.70710677, %v1229_v49  ;;  %908 = vrsqrt.f32 %v500_v53  ;;  %v561_v40 = vmul.f32 0.5, %v1229_v49 }
 0x1a5   : > { %v891_v50 = vpop.eup %890  ;;  %645 = vst [vmem:[%s1233_s29 + $0x48] sm:$0xff] %v629_v54  ;;  %v607_v60 = vadd.f32 1.0, %v889_v51  ;;  %v1238_v61 = vmul.f32 %v1188_v33, %v521_v48  ;;  %910 = vrsqrt.f32 %v499_v55 }
 0x1a6   : > { %v893_v52 = vpop.eup %892  ;;  %637 = vst [vmem:[%s1233_s29 + $0x8] sm:$0xff] %v621_v56  ;;  %v604_v3 = vadd.f32 1.0, %v891_v50  ;;  %912 = verf.f32 %v577_v59 }
 0x1a7   : > { %v895_v4 = vpop.eup %894  ;;  %v623_v5 = vmul.f32 %v607_v60, %v559_v26  ;;  %v576_v7 = vmul.f32 0.70710677, %v1238_v61  ;;  %v530_v34 = vmul.f32 %v893_v52, %v1157_v57  ;;  %v560_v45 = vmul.f32 0.5, %v1238_v61 }
 0x1a8   : > { %v897_v0 = vpop.eup %896  ;;  %v620_v8 = vmul.f32 %v604_v3, %v556_v25  ;;  %v529_v29 = vmul.f32 %v895_v4, %v1159_v58 }
 0x1a9   : > { %v899_v9 = vpop.eup %898  ;;  %639 = vst [vmem:[%s1233_s29 + $0x18] sm:$0xff] %v623_v5  ;;  %v615_v11 = vadd.f32 1.0, %v897_v0  ;;  %914 = verf.f32 %v576_v7  ;;  %v553_v6 = vmul.f32 %v1188_v33, %v530_v34 }
 0x1aa   : > { %v901_v12 = vpop.eup %900  ;;  %636 = vst [vmem:[%s1233_s29] sm:$0xff] %v620_v8  ;;  %v612_v15 = vadd.f32 1.0, %v899_v9  ;;  %v552_v57 = vmul.f32 %v1188_v33, %v529_v29 }
 0x1ab   : > { %v903_v16 = vpop.eup %902  ;;  %v631_v36 = vmul.f32 %v615_v11, %v567_v10  ;;  %v585_v58 = vmul.f32 0.70710677, %v553_v6  ;;  %v524_v18 = vmul.f32 %v901_v12, %v1167_v62  ;;  %v569_v55 = vmul.f32 0.5, %v553_v6 }
 0x1ac   : > { %v905_v19 = vpop.eup %904  ;;  %v628_v13 = vmul.f32 %v612_v15, %v564_v14  ;;  %v584_v38 = vmul.f32 0.70710677, %v552_v57  ;;  %v523_v20 = vmul.f32 %v903_v16, %v1169_v63 }
 0x1ad   : > { %v907_v21 = vpop.eup %906  ;;  %647 = vst [vmem:[%s1233_s29 + $0x58] sm:$0xff] %v631_v36  ;;  %v606_v23 = vadd.f32 1.0, %v905_v19  ;;  %916 = verf.f32 %v585_v58  ;;  %v547_v17 = vmul.f32 %v1188_v33, %v524_v18 }
 0x1ae   : > { %v909_v27 = vpop.eup %908  ;;  %644 = vst [vmem:[%s1233_s29 + $0x40] sm:$0xff] %v628_v13  ;;  %v614_v30 = vadd.f32 1.0, %v907_v21  ;;  %918 = verf.f32 %v584_v38  ;;  %v546_v62 = vmul.f32 %v1188_v33, %v523_v20 }
 0x1af   : > { %v911_v31 = vpop.eup %910  ;;  %v622_v63 = vmul.f32 %v606_v23, %v558_v22  ;;  %v579_v32 = vmul.f32 0.70710677, %v547_v17  ;;  %v532_v35 = vmul.f32 %v909_v27, %v1173_v1  ;;  %v563_v61 = vmul.f32 0.5, %v547_v17 }
 0x1b0   : > { %v913_v24 = vpop.eup %912  ;;  %v630_v37 = vmul.f32 %v614_v30, %v566_v28  ;;  %v578_v47 = vmul.f32 0.70710677, %v546_v62  ;;  %v531_v39 = vmul.f32 %v911_v31, %v1175_v2  ;;  %v562_v25 = vmul.f32 0.5, %v546_v62 }
 0x1b1   : > { %638 = vst [vmem:[%s1233_s29 + $0x10] sm:$0xff] %v622_v63  ;;  %v609_v46 = vadd.f32 1.0, %v913_v24  ;;  %920 = verf.f32 %v579_v32  ;;  %v555_v41 = vmul.f32 %v1188_v33, %v532_v35 }
 0x1b2   : > { %646 = vst [vmem:[%s1233_s29 + $0x50] sm:$0xff] %v630_v37  ;;  %922 = verf.f32 %v578_v47  ;;  %v554_v42 = vmul.f32 %v1188_v33, %v531_v39  ;;  %v568_v33 = vmul.f32 0.5, %v552_v57 }
 0x1b3   : > { %v915_v43 = vpop.eup %914  ;;  %v625_v1 = vmul.f32 %v609_v46, %v561_v40  ;;  %v587_v44 = vmul.f32 0.70710677, %v555_v41  ;;  %v571_v0 = vmul.f32 0.5, %v555_v41 }
 0x1b4   : > { %v608_v53 = vadd.f32 1.0, %v915_v43  ;;  %v586_v54 = vmul.f32 0.70710677, %v554_v42  ;;  %v570_v29 = vmul.f32 0.5, %v554_v42 }
 0x1b5   : > { %641 = vst [vmem:[%s1233_s29 + $0x28] sm:$0xff] %v625_v1  ;;  %924 = verf.f32 %v587_v44 }
 0x1b6   : > { %v624_v2 = vmul.f32 %v608_v53, %v560_v45  ;;  %926 = verf.f32 %v586_v54 }
 0x1b7   : > { %v917_v49 = vpop.eup %916 }
 0x1b8   : > { %v919_v48 = vpop.eup %918  ;;  %640 = vst [vmem:[%s1233_s29 + $0x20] sm:$0xff] %v624_v2  ;;  %v617_v51 = vadd.f32 1.0, %v917_v49 }
 0x1b9   : > { %v616_v56 = vadd.f32 1.0, %v919_v48 }
 0x1ba   : > { %v633_v59 = vmul.f32 %v617_v51, %v569_v55 }
 0x1bb   : > { %v921_v50 = vpop.eup %920  ;;  %v632_v26 = vmul.f32 %v616_v56, %v568_v33 }
 0x1bc   : > { %v923_v60 = vpop.eup %922  ;;  %649 = vst [vmem:[%s1233_s29 + $0x68] sm:$0xff] %v633_v59  ;;  %v611_v52 = vadd.f32 1.0, %v921_v50 }
 0x1bd   : > { %648 = vst [vmem:[%s1233_s29 + $0x60] sm:$0xff] %v632_v26  ;;  %v610_v3 = vadd.f32 1.0, %v923_v60 }
 0x1be   : > { %v627_v4 = vmul.f32 %v611_v52, %v563_v61 }
 0x1bf   : > { %v925_v5 = vpop.eup %924  ;;  %v626_v7 = vmul.f32 %v610_v3, %v562_v25 }
 0x1c0   : > { %v927_v34 = vpop.eup %926  ;;  %643 = vst [vmem:[%s1233_s29 + $0x38] sm:$0xff] %v627_v4  ;;  %v619_v8 = vadd.f32 1.0, %v925_v5 }
 0x1c1   : > { %642 = vst [vmem:[%s1233_s29 + $0x30] sm:$0xff] %v626_v7  ;;  %v618_v9 = vadd.f32 1.0, %v927_v34 }
 0x1c2   : > { %v635_v10 = vmul.f32 %v619_v8, %v571_v0 }
 0x1c3   : > { %v634_v11 = vmul.f32 %v618_v9, %v570_v29 }
 0x1c4   : > { %651 = vst [vmem:[%s1233_s29 + $0x78] sm:$0xff] %v635_v10 }
 0x1c5   : > { %650 = vst [vmem:[%s1233_s29 + $0x70] sm:$0xff] %v634_v11 }
 0x1c6   : > { %941 = shalt.err (!%p938_p3)
}
 0x1c7   : > { %s942_s13 = scalar_lea.hbm %s1278_s8, 2048  ;;  %s946_s22 = scalar_lea.hbm %s1331_s4, 4096 }
 0x1c8   : > { %p943_p4 = scmp.ne.s32.totalorder %s1278_s8, %s942_s13  ;;  %p947_p9 = scmp.lt.u32.totalorder %s1278_s8, %s1331_s4 }
 0x1c9   : > { %p948_p10 = scmp.lt.u32.totalorder %s946_s22, %s942_s13  ;;  %p950_p12 = scmp.lt.u32.totalorder %s942_s13, %s1278_s8 }
 0x1ca   : > { %p944_p7 = pnand %p943_p4, %p1058_p5 }
 0x1cb   : > { %p949_p11 = por %p948_p10, %p947_p9 }
 0x1cc   : > { %p945_p8 = pneg %p944_p7 }
 0x1cd   : > { %p951_p13 = por %p950_p12, %p949_p11 }
 0x1cf   : > { %p952_p0 = pnand %p951_p13, %p945_p8 }
 0x1d1   : > { %955 = shalt.err (!%p952_p0)
}
 0x1d2   : > { %s993_s28 = smov 128   ;;  %s994_s29 = smov 8  }
 0x1d3   : > { %823 = dma.vmem_to_hbm [thread:$0]  (%p1058_p5), %s1280_s5, 2048, %s1278_s8, %s1286_s19, %s993_s28, %s993_s28, %s994_s29  }
 0x1d4 PF: > { %p829_p1 = scmp.ge.s32.totalorder %s990_s18, 2  ;;  %s681_s30 = sand.u32 1, %s978_s15  }
 0x1d5   : > { %s682_s6 = scalar_lea.sflag [#allocation3], %s681_s30 }
 0x1d6   : > { %p826_p2 = pnand %p829_p1, %p1062_p6 }
 0x1d8   : > { %973 = dma.done.wait (!%p826_p2), %s682_s6, 2048  }
 0x1d9   : > { %975 = vsyncadd (!%p826_p2), %s682_s6, 4294965248  ;;  %p14_p3 = scmp.ge.s32.totalorder %s1045_s21, 4   ;;  %s1334_s15 = smov %s982_s16 }
 0x1da   : > { %s1335_s16 = smov %s986_s17  ;;  %s1336_s17 = smov %s1056_s24 }
 0x1db   : > { %s1337_s18 = smov %s1045_s21  ;;  %16 = sbr.rel (!%p14_p3) target bundleno = 3 (0x3), region = 71 }
 0x1e2   :  { %687 = vsyncpa [#allocation3], 1 }
 0x1e3   :  { %689 = vsyncpa [#allocation3 + $0x1], 1 }

</bundles_post_ra>
